<compile_context>
chip_gen: v6e
topology: v6e:2x2x1
jax: 0.10.0
libtpu: 0.0.40
codegen_flags: <defaults>
</compile_context>

<pallas_src>
import functools

import jax
import jax.numpy as jnp
from jax import lax
from jax.experimental import pallas as pl
from jax.experimental.pallas import tpu as pltpu

VMEM = pltpu.MemorySpace.VMEM
SMEM = pltpu.MemorySpace.SMEM
LANE = 128


# --------------------------------------------------------------------------
# Fused Pallas kernel
# --------------------------------------------------------------------------
def _fused_forward_kernel(
    # SMEM (scalar-path) inputs
    alpha_ref,
    # VMEM inputs
    x_ref, adj_blk_ref, a_s_ref, mask_ref,
    pre_w_ref, pre_b_ref,
    fc1_w_ref, fc1_b_ref,
    fc2_w_ref, fc2_b_ref,
    fc3_w_ref, fc3_b_ref,
    bn_g_ref, bn_b_ref,
    gcn1_w_ref, gcn1_b_ref,
    gcn2_w_ref, gcn2_b_ref,
    # output (lane-dense packed slab)
    out_ref,
    *, n_graphs, n_nodes, eps,
):
    B, N = n_graphs, n_nodes
    P = pre_w_ref.shape[1]
    L1 = fc1_w_ref.shape[1]
    C = fc3_w_ref.shape[1]
    M, PAD = out_ref.shape
    mx = pre_w_ref.dtype          # MXU operand dtype (bf16 on v6e/v7x, f32 optional)
    f32 = jnp.float32

    alpha = alpha_ref[0]

    # ---- batched graph propagation over ALL graphs at once (block-diag adj) ----
    # x rows are node-major: row n*B + b  <->  graph b, node n.
    x2 = x_ref[...]                                      # (N*B, F) f32
    adj = adj_blk_ref[...]                               # (N*B, N*B) f32 block-diag
    deg = jnp.sum(adj, axis=-1, keepdims=True)           # XLU row-reduce (not A@ones)
    deg = jnp.where(deg == 0.0, 1.0, deg)                # zero-degree -> 1 (as in spagog)
    d_is = lax.rsqrt(deg)                                # (N*B, 1) f32
    ax = jnp.dot(adj.astype(mx), (d_is * x2).astype(mx), preferred_element_type=f32)
    h = alpha * x2 + d_is * ax                           # (alpha*I + D^-1/2 A D^-1/2) x
    hp = jnp.maximum(
        jnp.dot(h.astype(mx), pre_w_ref[...], preferred_element_type=f32)
        + pre_b_ref[...], 0.0)                           # (N*B, P) f32

    # ---- fc1: one logical (B, N*P) @ (N*P, L1) matmul, K-chunked over nodes ----
    # Node-major layout makes each per-node row block contiguous, so every chunk
    # is a full-batch (B, P) @ (P, L1) MXU op with the accumulator held in vregs.
    # TODO(synk): at realistic N*P x L1, give fc1_w its own grid axis (BlockSpec
    #             index_map + pl.when init/finalize) to K-tile it for v7x's 64 MiB VMEM.
    hp_mx = hp.astype(mx)
    fc1_pre = jnp.zeros((B, L1), f32)
    for n in range(N):                                   # static unroll, N chunks
        fc1_pre = fc1_pre + jnp.dot(hp_mx[n * B:(n + 1) * B, :],
                                    fc1_w_ref[n * P:(n + 1) * P, :],
                                    preferred_element_type=f32)
    h1 = jnp.maximum(fc1_pre + fc1_b_ref[...], 0.0)                       # (B, L1)
    emb = jnp.dot(h1.astype(mx), fc2_w_ref[...],
                  preferred_element_type=f32) + fc2_b_ref[...]            # (B, L2)

    # ---- gc_model.forward_last_layer ----
    gc = jnp.dot(jnp.maximum(emb, 0.0).astype(mx), fc3_w_ref[...],
                 preferred_element_type=f32) + fc3_b_ref[...]             # (B, C)

    # ---- BatchNorm1d on attr embeddings (training-mode batch statistics, f32) ----
    mean = jnp.mean(emb, axis=0, keepdims=True)
    var = jnp.mean(jnp.square(emb - mean), axis=0, keepdims=True)
    emb_bn = (emb - mean) * lax.rsqrt(var + eps) * bn_g_ref[...] + bn_b_ref[...]

    # ---- symmetric normalization of the dense sample adjacency (self loops) ----
    a_s = a_s_ref[...]                                   # (B, B) 0/1, self loops, f32
    dr = lax.rsqrt(jnp.sum(a_s, axis=1, keepdims=True))
    dc = lax.rsqrt(jnp.sum(a_s, axis=0, keepdims=True))
    a_hat = (a_s * dr * dc).astype(mx)                   # (B, B)

    # ---- nc_model: 2-layer GCN over inter-sample edges ----
    xw1 = jnp.dot(emb_bn.astype(mx), gcn1_w_ref[...], preferred_element_type=f32)
    g1 = jnp.maximum(
        jnp.dot(a_hat, xw1.astype(mx), preferred_element_type=f32) + gcn1_b_ref[...], 0.0)
    # TODO(synk): dropout between the GCN layers omitted (inference/eval no-op).
    xw2 = jnp.dot(g1.astype(mx), gcn2_w_ref[...], preferred_element_type=f32)
    logits = jnp.dot(a_hat, xw2.astype(mx), preferred_element_type=f32) + gcn2_b_ref[...]

    # ---- masked row selection (single vectorized one-hot) + lane-dense packing ----
    # S[i, b] = (b == mask[i]); packed columns [0,C) = final logits, [C,2C) = gc.
    # All selection / packing matmuls stay in f32 (correctness note from review).
    S = (lax.broadcasted_iota(jnp.int32, (M, B), 1) == mask_ref[...]).astype(f32)
    col = lax.broadcasted_iota(jnp.int32, (C, PAD), 1)
    row = lax.broadcasted_iota(jnp.int32, (C, PAD), 0)
    E1 = (col == row).astype(f32)                        # embed logits at cols [0, C)
    E2 = (col == row + C).astype(f32)                    # embed gc     at cols [C, 2C)
    packed = (jnp.dot(logits, E1, preferred_element_type=f32)
              + jnp.dot(gc, E2, preferred_element_type=f32))              # (B, PAD)
    out_ref[...] = jnp.dot(S, packed, preferred_element_type=f32)         # (M, PAD)


# --------------------------------------------------------------------------
# Wrapper (single pallas_call, everything VMEM/SMEM-resident)
# --------------------------------------------------------------------------
def graph_node_classification_forward(params, x, adj, edge_index, mask,
                                       *, matmul_dtype=jnp.bfloat16, bn_eps=1e-5):
    B, N, F = x.shape
    P = params["pre_w"].shape[1]
    L1 = params["fc1_w"].shape[1]
    L2 = params["fc2_w"].shape[1]
    C = params["fc3_w"].shape[1]
    H = params["gcn1_w"].shape[1]
    M = mask.shape[0]
    PAD = max(LANE, -(-(2 * C) // LANE) * LANE)          # lane-dense output width
    mx = matmul_dtype

    # Node-major stacking (row index = n*B + b) so the kernel's fc1 K-chunks
    # contract against contiguous full-batch row blocks.
    # TODO(synk): at realistic (B, N) sizes, prefer a B grid axis marked
    #             "parallel" (v7x has 2 TensorCores) over the dense block-diag.
    x2 = jnp.transpose(x, (1, 0, 2)).reshape(N * B, F).astype(jnp.float32)
    eye_b = jnp.eye(B, dtype=jnp.float32)
    adj_blk = eye_b[:, None, :, None] * adj.astype(jnp.float32)[:, :, None, :]
    adj_blk = jnp.transpose(adj_blk, (1, 0, 3, 2)).reshape(N * B, N * B)

    # Dense inter-sample adjacency with self loops (symmetric, 0/1) — built once
    # in XLA; the kernel only does the symmetric normalization.
    src = edge_index[0].astype(jnp.int32)
    dst = edge_index[1].astype(jnp.int32)
    a_s = jnp.eye(B, dtype=jnp.float32)
    a_s = a_s.at[src, dst].set(1.0)
    a_s = a_s.at[dst, src].set(1.0)

    alpha = jnp.asarray(params["alpha"], jnp.float32).reshape(1)
    mask_col = mask.astype(jnp.int32).reshape(M, 1)

    operands = (
        alpha,
        x2, adj_blk, a_s, mask_col,
        params["pre_w"].astype(mx), params["pre_b"],
        params["fc1_w"].astype(mx), params["fc1_b"],
        params["fc2_w"].astype(mx), params["fc2_b"],
        params["fc3_w"].astype(mx), params["fc3_b"],
        params["bn_gamma"], params["bn_beta"],
        params["gcn1_w"].astype(mx), params["gcn1_b"],
        params["gcn2_w"].astype(mx), params["gcn2_b"],
    )

    # Advisory cost hint for XLA's scheduler.
    flops = 2.0 * ((N * B) * (N * B) * F + (N * B) * F * P + (N * B) * P * L1
                   + B * L1 * L2 + B * L2 * C + B * L2 * H + B * B * H
                   + B * H * C + B * B * C + M * B * PAD + B * C * PAD)
    bytes_accessed = sum(int(o.size) * o.dtype.itemsize for o in operands) + M * PAD * 4
    cost = pl.CostEstimate(flops=int(flops),
                           transcendentals=int(N * B + 2 * B + L2),
                           bytes_accessed=int(bytes_accessed))

    smem = pl.BlockSpec(memory_space=SMEM)
    vmem = pl.BlockSpec(memory_space=VMEM)

    out = pl.pallas_call(
        functools.partial(_fused_forward_kernel, n_graphs=B, n_nodes=N, eps=bn_eps),
        out_shape=jax.ShapeDtypeStruct((M, PAD), jnp.float32),
        in_specs=[smem] + [vmem] * 18,
        out_specs=vmem,
        compiler_params=pltpu.CompilerParams(vmem_limit_bytes=32 * 1024 * 1024),
        cost_estimate=cost,
    )(*operands)

    final_out = out[:, :C]          # nc_model logits[mask]
    gc_out = out[:, C:2 * C]        # gc_model logits[mask]
    return final_out, gc_out


# --------------------------------------------------------------------------
# Parameters
# --------------------------------------------------------------------------
def init_params(key, N, F, P, L1, L2, C, H):
    ks = jax.random.split(key, 6)

    def lin(k, fan_in, fan_out):
        w = jax.random.normal(k, (fan_in, fan_out), jnp.float32) * 0.1
        b = jnp.zeros((1, fan_out), jnp.float32)           # biases stored as (1, K)
        return w, b

    p = {"alpha": jnp.float32(1.0)}
    p["pre_w"], p["pre_b"] = lin(ks[0], F, P)               # gc_model.pre_weighting
    p["fc1_w"], p["fc1_b"] = lin(ks[1], N * P, L1)          # gc_model.fc1
    p["fc2_w"], p["fc2_b"] = lin(ks[2], L1, L2)             # gc_model.fc2
    p["fc3_w"], p["fc3_b"] = lin(ks[3], L2, C)              # gc_model.fc3
    p["bn_gamma"] = jnp.ones((1, L2), jnp.float32)          # BatchNorm1d(fc3.in_features)
    p["bn_beta"] = jnp.zeros((1, L2), jnp.float32)
    p["gcn1_w"], p["gcn1_b"] = lin(ks[4], L2, H)            # nc_model GCNConv 1
    p["gcn2_w"], p["gcn2_b"] = lin(ks[5], H, C)             # nc_model GCNConv 2
    return p


# --------------------------------------------------------------------------
# Main
# --------------------------------------------------------------------------
if __name__ == "__main__":
    B, N, F = 8, 8, 4          # samples, nodes/graph, features/node
    P, L1, L2 = 8, 32, 16      # pre_weighting, fc1, fc2 widths
    C, H = 3, 16               # num_classes, nc hidden width

    key = jax.random.PRNGKey(0)
    k_x, k_a, k_p = jax.random.split(key, 3)

    x = jax.random.normal(k_x, (B, N, F), jnp.float32)
    a = (jax.random.uniform(k_a, (B, N, N)) < 0.3).astype(jnp.float32)
    a = jnp.triu(a, 1)
    adj = a + jnp.transpose(a, (0, 2, 1))                   # symmetric, no self loops

    inter_sample_edges = jnp.array(
        [[0, 1, 2, 3, 4, 5, 6], [1, 2, 3, 4, 5, 6, 7]], jnp.int32)   # (2, E)
    mask = jnp.arange(6, dtype=jnp.int32)                   # first 6 samples

    params = init_params(k_p, N, F, P, L1, L2, C, H)

    fwd = jax.jit(functools.partial(graph_node_classification_forward,
                                    matmul_dtype=jnp.bfloat16))
    final_output, gc_output = fwd(params, x, adj, inter_sample_edges, mask)
    jax.block_until_ready((final_output, gc_output))

    assert final_output.shape == (6, C) and gc_output.shape == (6, C)
    assert bool(jnp.all(jnp.isfinite(final_output))) and bool(jnp.all(jnp.isfinite(gc_output)))
    print("KERNEL_OK")
</pallas_src>

<mosaic_0001>
module attributes {stable_mosaic.version = 11 : i64} {
  func.func @_fused_forward_kernel(%arg0: memref<1xf32, #tpu.memory_space<smem>>, %arg1: memref<64x4xf32, #tpu.memory_space<vmem>>, %arg2: memref<64x64xf32, #tpu.memory_space<vmem>>, %arg3: memref<8x8xf32, #tpu.memory_space<vmem>>, %arg4: memref<6x1xi32, #tpu.memory_space<vmem>>, %arg5: memref<4x8xbf16, #tpu.memory_space<vmem>>, %arg6: memref<1x8xf32, #tpu.memory_space<vmem>>, %arg7: memref<64x32xbf16, #tpu.memory_space<vmem>>, %arg8: memref<1x32xf32, #tpu.memory_space<vmem>>, %arg9: memref<32x16xbf16, #tpu.memory_space<vmem>>, %arg10: memref<1x16xf32, #tpu.memory_space<vmem>>, %arg11: memref<16x3xbf16, #tpu.memory_space<vmem>>, %arg12: memref<1x3xf32, #tpu.memory_space<vmem>>, %arg13: memref<1x16xf32, #tpu.memory_space<vmem>>, %arg14: memref<1x16xf32, #tpu.memory_space<vmem>>, %arg15: memref<16x16xbf16, #tpu.memory_space<vmem>>, %arg16: memref<1x16xf32, #tpu.memory_space<vmem>>, %arg17: memref<16x3xbf16, #tpu.memory_space<vmem>>, %arg18: memref<1x3xf32, #tpu.memory_space<vmem>>, %arg19: memref<6x128xf32, #tpu.memory_space<vmem>>) attributes {dimension_semantics = [], scalar_prefetch = 0 : i64, scratch_operands = 0 : i64, tpu.core_type = #tpu.core_type<tc>} {
    %c0 = arith.constant 0 : index
    %0 = memref.load %arg0[%c0] : memref<1xf32, #tpu.memory_space<smem>>
    %c0_0 = arith.constant 0 : index
    %c0_1 = arith.constant 0 : index
    %1 = vector.load %arg1[%c0_0, %c0_1] : memref<64x4xf32, #tpu.memory_space<vmem>>, vector<64x4xf32>
    %c0_2 = arith.constant 0 : index
    %c0_3 = arith.constant 0 : index
    %2 = vector.load %arg2[%c0_2, %c0_3] : memref<64x64xf32, #tpu.memory_space<vmem>>, vector<64x64xf32>
    %cst = arith.constant dense<0.000000e+00> : vector<64xf32>
    %3 = vector.multi_reduction <add>, %2, %cst [1] : vector<64x64xf32> to vector<64xf32>
    %4 = vector.shape_cast %3 : vector<64xf32> to vector<64x1xf32>
    %cst_4 = arith.constant 0.000000e+00 : f32
    %5 = vector.broadcast %cst_4 : f32 to vector<64x1xf32>
    %6 = arith.cmpf oeq, %4, %5 : vector<64x1xf32>
    %cst_5 = arith.constant 1.000000e+00 : f32
    %7 = vector.broadcast %cst_5 : f32 to vector<64x1xf32>
    %8 = arith.select %6, %7, %4 : vector<64x1xi1>, vector<64x1xf32>
    %9 = math.rsqrt %8 : vector<64x1xf32>
    %10 = arith.truncf %2 : vector<64x64xf32> to vector<64x64xbf16>
    %11 = vector.broadcast %9 : vector<64x1xf32> to vector<64x4xf32>
    %12 = arith.mulf %11, %1 : vector<64x4xf32>
    %13 = arith.truncf %12 : vector<64x4xf32> to vector<64x4xbf16>
    %cst_6 = arith.constant dense<0.000000e+00> : vector<64x4xf32>
    %14 = tpu.matmul %10, %13, %cst_6 {dimension_numbers = #tpu.dot_dimension_numbers<[1], [0], [0], [1], [0, 0, 1, 1], [], []>} : vector<64x64xbf16>, vector<64x4xbf16>, vector<64x4xf32> -> vector<64x4xf32>
    %15 = vector.broadcast %0 : f32 to vector<64x4xf32>
    %16 = arith.mulf %15, %1 : vector<64x4xf32>
    %17 = vector.broadcast %9 : vector<64x1xf32> to vector<64x4xf32>
    %18 = arith.mulf %17, %14 : vector<64x4xf32>
    %19 = arith.addf %16, %18 : vector<64x4xf32>
    %20 = arith.truncf %19 : vector<64x4xf32> to vector<64x4xbf16>
    %c0_7 = arith.constant 0 : index
    %c0_8 = arith.constant 0 : index
    %21 = vector.load %arg5[%c0_7, %c0_8] : memref<4x8xbf16, #tpu.memory_space<vmem>>, vector<4x8xbf16>
    %cst_9 = arith.constant dense<0.000000e+00> : vector<64x8xf32>
    %22 = tpu.matmul %20, %21, %cst_9 {dimension_numbers = #tpu.dot_dimension_numbers<[1], [0], [0], [1], [0, 0, 1, 1], [], []>} : vector<64x4xbf16>, vector<4x8xbf16>, vector<64x8xf32> -> vector<64x8xf32>
    %c0_10 = arith.constant 0 : index
    %c0_11 = arith.constant 0 : index
    %23 = vector.load %arg6[%c0_10, %c0_11] : memref<1x8xf32, #tpu.memory_space<vmem>>, vector<1x8xf32>
    %24 = vector.broadcast %23 : vector<1x8xf32> to vector<64x8xf32>
    %25 = arith.addf %22, %24 : vector<64x8xf32>
    %cst_12 = arith.constant 0.000000e+00 : f32
    %26 = vector.broadcast %cst_12 : f32 to vector<64x8xf32>
    %27 = arith.maximumf %25, %26 : vector<64x8xf32>
    %28 = arith.truncf %27 : vector<64x8xf32> to vector<64x8xbf16>
    %cst_13 = arith.constant 0.000000e+00 : f32
    %29 = vector.broadcast %cst_13 : f32 to vector<8x32xf32>
    %30 = vector.extract_strided_slice %28 {offsets = [0, 0], sizes = [8, 8], strides = [1, 1]} : vector<64x8xbf16> to vector<8x8xbf16>
    %c0_14 = arith.constant 0 : index
    %c0_15 = arith.constant 0 : index
    %31 = vector.load %arg7[%c0_14, %c0_15] : memref<64x32xbf16, #tpu.memory_space<vmem>>, vector<8x32xbf16>
    %cst_16 = arith.constant dense<0.000000e+00> : vector<8x32xf32>
    %32 = tpu.matmul %30, %31, %cst_16 {dimension_numbers = #tpu.dot_dimension_numbers<[1], [0], [0], [1], [0, 0, 1, 1], [], []>} : vector<8x8xbf16>, vector<8x32xbf16>, vector<8x32xf32> -> vector<8x32xf32>
    %33 = arith.addf %29, %32 : vector<8x32xf32>
    %34 = vector.extract_strided_slice %28 {offsets = [8, 0], sizes = [8, 8], strides = [1, 1]} : vector<64x8xbf16> to vector<8x8xbf16>
    %c8 = arith.constant 8 : index
    %c0_17 = arith.constant 0 : index
    %35 = vector.load %arg7[%c8, %c0_17] : memref<64x32xbf16, #tpu.memory_space<vmem>>, vector<8x32xbf16>
    %cst_18 = arith.constant dense<0.000000e+00> : vector<8x32xf32>
    %36 = tpu.matmul %34, %35, %cst_18 {dimension_numbers = #tpu.dot_dimension_numbers<[1], [0], [0], [1], [0, 0, 1, 1], [], []>} : vector<8x8xbf16>, vector<8x32xbf16>, vector<8x32xf32> -> vector<8x32xf32>
    %37 = arith.addf %33, %36 : vector<8x32xf32>
    %38 = vector.extract_strided_slice %28 {offsets = [16, 0], sizes = [8, 8], strides = [1, 1]} : vector<64x8xbf16> to vector<8x8xbf16>
    %c16 = arith.constant 16 : index
    %c0_19 = arith.constant 0 : index
    %39 = vector.load %arg7[%c16, %c0_19] : memref<64x32xbf16, #tpu.memory_space<vmem>>, vector<8x32xbf16>
    %cst_20 = arith.constant dense<0.000000e+00> : vector<8x32xf32>
    %40 = tpu.matmul %38, %39, %cst_20 {dimension_numbers = #tpu.dot_dimension_numbers<[1], [0], [0], [1], [0, 0, 1, 1], [], []>} : vector<8x8xbf16>, vector<8x32xbf16>, vector<8x32xf32> -> vector<8x32xf32>
    %41 = arith.addf %37, %40 : vector<8x32xf32>
    %42 = vector.extract_strided_slice %28 {offsets = [24, 0], sizes = [8, 8], strides = [1, 1]} : vector<64x8xbf16> to vector<8x8xbf16>
    %c24 = arith.constant 24 : index
    %c0_21 = arith.constant 0 : index
    %43 = vector.load %arg7[%c24, %c0_21] : memref<64x32xbf16, #tpu.memory_space<vmem>>, vector<8x32xbf16>
    %cst_22 = arith.constant dense<0.000000e+00> : vector<8x32xf32>
    %44 = tpu.matmul %42, %43, %cst_22 {dimension_numbers = #tpu.dot_dimension_numbers<[1], [0], [0], [1], [0, 0, 1, 1], [], []>} : vector<8x8xbf16>, vector<8x32xbf16>, vector<8x32xf32> -> vector<8x32xf32>
    %45 = arith.addf %41, %44 : vector<8x32xf32>
    %46 = vector.extract_strided_slice %28 {offsets = [32, 0], sizes = [8, 8], strides = [1, 1]} : vector<64x8xbf16> to vector<8x8xbf16>
    %c32 = arith.constant 32 : index
    %c0_23 = arith.constant 0 : index
    %47 = vector.load %arg7[%c32, %c0_23] : memref<64x32xbf16, #tpu.memory_space<vmem>>, vector<8x32xbf16>
    %cst_24 = arith.constant dense<0.000000e+00> : vector<8x32xf32>
    %48 = tpu.matmul %46, %47, %cst_24 {dimension_numbers = #tpu.dot_dimension_numbers<[1], [0], [0], [1], [0, 0, 1, 1], [], []>} : vector<8x8xbf16>, vector<8x32xbf16>, vector<8x32xf32> -> vector<8x32xf32>
    %49 = arith.addf %45, %48 : vector<8x32xf32>
    %50 = vector.extract_strided_slice %28 {offsets = [40, 0], sizes = [8, 8], strides = [1, 1]} : vector<64x8xbf16> to vector<8x8xbf16>
    %c40 = arith.constant 40 : index
    %c0_25 = arith.constant 0 : index
    %51 = vector.load %arg7[%c40, %c0_25] : memref<64x32xbf16, #tpu.memory_space<vmem>>, vector<8x32xbf16>
    %cst_26 = arith.constant dense<0.000000e+00> : vector<8x32xf32>
    %52 = tpu.matmul %50, %51, %cst_26 {dimension_numbers = #tpu.dot_dimension_numbers<[1], [0], [0], [1], [0, 0, 1, 1], [], []>} : vector<8x8xbf16>, vector<8x32xbf16>, vector<8x32xf32> -> vector<8x32xf32>
    %53 = arith.addf %49, %52 : vector<8x32xf32>
    %54 = vector.extract_strided_slice %28 {offsets = [48, 0], sizes = [8, 8], strides = [1, 1]} : vector<64x8xbf16> to vector<8x8xbf16>
    %c48 = arith.constant 48 : index
    %c0_27 = arith.constant 0 : index
    %55 = vector.load %arg7[%c48, %c0_27] : memref<64x32xbf16, #tpu.memory_space<vmem>>, vector<8x32xbf16>
    %cst_28 = arith.constant dense<0.000000e+00> : vector<8x32xf32>
    %56 = tpu.matmul %54, %55, %cst_28 {dimension_numbers = #tpu.dot_dimension_numbers<[1], [0], [0], [1], [0, 0, 1, 1], [], []>} : vector<8x8xbf16>, vector<8x32xbf16>, vector<8x32xf32> -> vector<8x32xf32>
    %57 = arith.addf %53, %56 : vector<8x32xf32>
    %58 = vector.extract_strided_slice %28 {offsets = [56, 0], sizes = [8, 8], strides = [1, 1]} : vector<64x8xbf16> to vector<8x8xbf16>
    %c56 = arith.constant 56 : index
    %c0_29 = arith.constant 0 : index
    %59 = vector.load %arg7[%c56, %c0_29] : memref<64x32xbf16, #tpu.memory_space<vmem>>, vector<8x32xbf16>
    %cst_30 = arith.constant dense<0.000000e+00> : vector<8x32xf32>
    %60 = tpu.matmul %58, %59, %cst_30 {dimension_numbers = #tpu.dot_dimension_numbers<[1], [0], [0], [1], [0, 0, 1, 1], [], []>} : vector<8x8xbf16>, vector<8x32xbf16>, vector<8x32xf32> -> vector<8x32xf32>
    %61 = arith.addf %57, %60 : vector<8x32xf32>
    %c0_31 = arith.constant 0 : index
    %c0_32 = arith.constant 0 : index
    %62 = vector.load %arg8[%c0_31, %c0_32] : memref<1x32xf32, #tpu.memory_space<vmem>>, vector<1x32xf32>
    %63 = vector.broadcast %62 : vector<1x32xf32> to vector<8x32xf32>
    %64 = arith.addf %61, %63 : vector<8x32xf32>
    %cst_33 = arith.constant 0.000000e+00 : f32
    %65 = vector.broadcast %cst_33 : f32 to vector<8x32xf32>
    %66 = arith.maximumf %64, %65 : vector<8x32xf32>
    %67 = arith.truncf %66 : vector<8x32xf32> to vector<8x32xbf16>
    %c0_34 = arith.constant 0 : index
    %c0_35 = arith.constant 0 : index
    %68 = vector.load %arg9[%c0_34, %c0_35] : memref<32x16xbf16, #tpu.memory_space<vmem>>, vector<32x16xbf16>
    %cst_36 = arith.constant dense<0.000000e+00> : vector<8x16xf32>
    %69 = tpu.matmul %67, %68, %cst_36 {dimension_numbers = #tpu.dot_dimension_numbers<[1], [0], [0], [1], [0, 0, 1, 1], [], []>} : vector<8x32xbf16>, vector<32x16xbf16>, vector<8x16xf32> -> vector<8x16xf32>
    %c0_37 = arith.constant 0 : index
    %c0_38 = arith.constant 0 : index
    %70 = vector.load %arg10[%c0_37, %c0_38] : memref<1x16xf32, #tpu.memory_space<vmem>>, vector<1x16xf32>
    %71 = vector.broadcast %70 : vector<1x16xf32> to vector<8x16xf32>
    %72 = arith.addf %69, %71 : vector<8x16xf32>
    %cst_39 = arith.constant 0.000000e+00 : f32
    %73 = vector.broadcast %cst_39 : f32 to vector<8x16xf32>
    %74 = arith.maximumf %72, %73 : vector<8x16xf32>
    %75 = arith.truncf %74 : vector<8x16xf32> to vector<8x16xbf16>
    %c0_40 = arith.constant 0 : index
    %c0_41 = arith.constant 0 : index
    %76 = vector.load %arg11[%c0_40, %c0_41] : memref<16x3xbf16, #tpu.memory_space<vmem>>, vector<16x3xbf16>
    %cst_42 = arith.constant dense<0.000000e+00> : vector<8x3xf32>
    %77 = tpu.matmul %75, %76, %cst_42 {dimension_numbers = #tpu.dot_dimension_numbers<[1], [0], [0], [1], [0, 0, 1, 1], [], []>} : vector<8x16xbf16>, vector<16x3xbf16>, vector<8x3xf32> -> vector<8x3xf32>
    %c0_43 = arith.constant 0 : index
    %c0_44 = arith.constant 0 : index
    %78 = vector.load %arg12[%c0_43, %c0_44] : memref<1x3xf32, #tpu.memory_space<vmem>>, vector<1x3xf32>
    %79 = vector.broadcast %78 : vector<1x3xf32> to vector<8x3xf32>
    %80 = arith.addf %77, %79 : vector<8x3xf32>
    %cst_45 = arith.constant dense<0.000000e+00> : vector<16xf32>
    %81 = vector.multi_reduction <add>, %72, %cst_45 [0] : vector<8x16xf32> to vector<16xf32>
    %82 = vector.shape_cast %81 : vector<16xf32> to vector<1x16xf32>
    %cst_46 = arith.constant 8.000000e+00 : f32
    %83 = vector.broadcast %cst_46 : f32 to vector<1x16xf32>
    %84 = arith.divf %82, %83 : vector<1x16xf32>
    %85 = vector.broadcast %84 : vector<1x16xf32> to vector<8x16xf32>
    %86 = arith.subf %72, %85 : vector<8x16xf32>
    %87 = arith.mulf %86, %86 : vector<8x16xf32>
    %cst_47 = arith.constant dense<0.000000e+00> : vector<16xf32>
    %88 = vector.multi_reduction <add>, %87, %cst_47 [0] : vector<8x16xf32> to vector<16xf32>
    %89 = vector.shape_cast %88 : vector<16xf32> to vector<1x16xf32>
    %cst_48 = arith.constant 8.000000e+00 : f32
    %90 = vector.broadcast %cst_48 : f32 to vector<1x16xf32>
    %91 = arith.divf %89, %90 : vector<1x16xf32>
    %92 = vector.broadcast %84 : vector<1x16xf32> to vector<8x16xf32>
    %93 = arith.subf %72, %92 : vector<8x16xf32>
    %cst_49 = arith.constant 9.99999974E-6 : f32
    %94 = vector.broadcast %cst_49 : f32 to vector<1x16xf32>
    %95 = arith.addf %91, %94 : vector<1x16xf32>
    %96 = math.rsqrt %95 : vector<1x16xf32>
    %97 = vector.broadcast %96 : vector<1x16xf32> to vector<8x16xf32>
    %98 = arith.mulf %93, %97 : vector<8x16xf32>
    %c0_50 = arith.constant 0 : index
    %c0_51 = arith.constant 0 : index
    %99 = vector.load %arg13[%c0_50, %c0_51] : memref<1x16xf32, #tpu.memory_space<vmem>>, vector<1x16xf32>
    %100 = vector.broadcast %99 : vector<1x16xf32> to vector<8x16xf32>
    %101 = arith.mulf %98, %100 : vector<8x16xf32>
    %c0_52 = arith.constant 0 : index
    %c0_53 = arith.constant 0 : index
    %102 = vector.load %arg14[%c0_52, %c0_53] : memref<1x16xf32, #tpu.memory_space<vmem>>, vector<1x16xf32>
    %103 = vector.broadcast %102 : vector<1x16xf32> to vector<8x16xf32>
    %104 = arith.addf %101, %103 : vector<8x16xf32>
    %c0_54 = arith.constant 0 : index
    %c0_55 = arith.constant 0 : index
    %105 = vector.load %arg3[%c0_54, %c0_55] : memref<8x8xf32, #tpu.memory_space<vmem>>, vector<8x8xf32>
    %cst_56 = arith.constant dense<0.000000e+00> : vector<8xf32>
    %106 = vector.multi_reduction <add>, %105, %cst_56 [1] : vector<8x8xf32> to vector<8xf32>
    %107 = vector.shape_cast %106 : vector<8xf32> to vector<8x1xf32>
    %108 = math.rsqrt %107 : vector<8x1xf32>
    %cst_57 = arith.constant dense<0.000000e+00> : vector<8xf32>
    %109 = vector.multi_reduction <add>, %105, %cst_57 [0] : vector<8x8xf32> to vector<8xf32>
    %110 = vector.shape_cast %109 : vector<8xf32> to vector<1x8xf32>
    %111 = math.rsqrt %110 : vector<1x8xf32>
    %112 = vector.broadcast %108 : vector<8x1xf32> to vector<8x8xf32>
    %113 = arith.mulf %105, %112 : vector<8x8xf32>
    %114 = vector.broadcast %111 : vector<1x8xf32> to vector<8x8xf32>
    %115 = arith.mulf %113, %114 : vector<8x8xf32>
    %116 = arith.truncf %115 : vector<8x8xf32> to vector<8x8xbf16>
    %117 = arith.truncf %104 : vector<8x16xf32> to vector<8x16xbf16>
    %c0_58 = arith.constant 0 : index
    %c0_59 = arith.constant 0 : index
    %118 = vector.load %arg15[%c0_58, %c0_59] : memref<16x16xbf16, #tpu.memory_space<vmem>>, vector<16x16xbf16>
    %cst_60 = arith.constant dense<0.000000e+00> : vector<8x16xf32>
    %119 = tpu.matmul %117, %118, %cst_60 {dimension_numbers = #tpu.dot_dimension_numbers<[1], [0], [0], [1], [0, 0, 1, 1], [], []>} : vector<8x16xbf16>, vector<16x16xbf16>, vector<8x16xf32> -> vector<8x16xf32>
    %120 = arith.truncf %119 : vector<8x16xf32> to vector<8x16xbf16>
    %cst_61 = arith.constant dense<0.000000e+00> : vector<8x16xf32>
    %121 = tpu.matmul %116, %120, %cst_61 {dimension_numbers = #tpu.dot_dimension_numbers<[1], [0], [0], [1], [0, 0, 1, 1], [], []>} : vector<8x8xbf16>, vector<8x16xbf16>, vector<8x16xf32> -> vector<8x16xf32>
    %c0_62 = arith.constant 0 : index
    %c0_63 = arith.constant 0 : index
    %122 = vector.load %arg16[%c0_62, %c0_63] : memref<1x16xf32, #tpu.memory_space<vmem>>, vector<1x16xf32>
    %123 = vector.broadcast %122 : vector<1x16xf32> to vector<8x16xf32>
    %124 = arith.addf %121, %123 : vector<8x16xf32>
    %cst_64 = arith.constant 0.000000e+00 : f32
    %125 = vector.broadcast %cst_64 : f32 to vector<8x16xf32>
    %126 = arith.maximumf %124, %125 : vector<8x16xf32>
    %127 = arith.truncf %126 : vector<8x16xf32> to vector<8x16xbf16>
    %c0_65 = arith.constant 0 : index
    %c0_66 = arith.constant 0 : index
    %128 = vector.load %arg17[%c0_65, %c0_66] : memref<16x3xbf16, #tpu.memory_space<vmem>>, vector<16x3xbf16>
    %cst_67 = arith.constant dense<0.000000e+00> : vector<8x3xf32>
    %129 = tpu.matmul %127, %128, %cst_67 {dimension_numbers = #tpu.dot_dimension_numbers<[1], [0], [0], [1], [0, 0, 1, 1], [], []>} : vector<8x16xbf16>, vector<16x3xbf16>, vector<8x3xf32> -> vector<8x3xf32>
    %130 = arith.truncf %129 : vector<8x3xf32> to vector<8x3xbf16>
    %cst_68 = arith.constant dense<0.000000e+00> : vector<8x3xf32>
    %131 = tpu.matmul %116, %130, %cst_68 {dimension_numbers = #tpu.dot_dimension_numbers<[1], [0], [0], [1], [0, 0, 1, 1], [], []>} : vector<8x8xbf16>, vector<8x3xbf16>, vector<8x3xf32> -> vector<8x3xf32>
    %c0_69 = arith.constant 0 : index
    %c0_70 = arith.constant 0 : index
    %132 = vector.load %arg18[%c0_69, %c0_70] : memref<1x3xf32, #tpu.memory_space<vmem>>, vector<1x3xf32>
    %133 = vector.broadcast %132 : vector<1x3xf32> to vector<8x3xf32>
    %134 = arith.addf %131, %133 : vector<8x3xf32>
    %135 = tpu.iota {dimensions = array<i32: 1>} : vector<6x8xi32>
    %c0_71 = arith.constant 0 : index
    %c0_72 = arith.constant 0 : index
    %136 = vector.load %arg4[%c0_71, %c0_72] : memref<6x1xi32, #tpu.memory_space<vmem>>, vector<6x1xi32>
    %137 = vector.broadcast %136 : vector<6x1xi32> to vector<6x8xi32>
    %138 = arith.cmpi eq, %135, %137 : vector<6x8xi32>
    %139 = arith.extui %138 : vector<6x8xi1> to vector<6x8xi32>
    %140 = arith.sitofp %139 : vector<6x8xi32> to vector<6x8xf32>
    %141 = tpu.iota {dimensions = array<i32: 1>} : vector<3x128xi32>
    %142 = tpu.iota {dimensions = array<i32: 0>} : vector<3x128xi32>
    %143 = arith.cmpi eq, %141, %142 : vector<3x128xi32>
    %144 = arith.extui %143 : vector<3x128xi1> to vector<3x128xi32>
    %145 = arith.sitofp %144 : vector<3x128xi32> to vector<3x128xf32>
    %c3_i32 = arith.constant 3 : i32
    %146 = vector.broadcast %c3_i32 : i32 to vector<3x128xi32>
    %147 = arith.addi %142, %146 : vector<3x128xi32>
    %148 = arith.cmpi eq, %141, %147 : vector<3x128xi32>
    %149 = arith.extui %148 : vector<3x128xi1> to vector<3x128xi32>
    %150 = arith.sitofp %149 : vector<3x128xi32> to vector<3x128xf32>
    %cst_73 = arith.constant dense<0.000000e+00> : vector<8x128xf32>
    %151 = tpu.matmul %134, %145, %cst_73 {dimension_numbers = #tpu.dot_dimension_numbers<[1], [0], [0], [1], [0, 0, 1, 1], [], []>} : vector<8x3xf32>, vector<3x128xf32>, vector<8x128xf32> -> vector<8x128xf32>
    %cst_74 = arith.constant dense<0.000000e+00> : vector<8x128xf32>
    %152 = tpu.matmul %80, %150, %cst_74 {dimension_numbers = #tpu.dot_dimension_numbers<[1], [0], [0], [1], [0, 0, 1, 1], [], []>} : vector<8x3xf32>, vector<3x128xf32>, vector<8x128xf32> -> vector<8x128xf32>
    %153 = arith.addf %151, %152 : vector<8x128xf32>
    %cst_75 = arith.constant dense<0.000000e+00> : vector<6x128xf32>
    %154 = tpu.matmul %140, %153, %cst_75 {dimension_numbers = #tpu.dot_dimension_numbers<[1], [0], [0], [1], [0, 0, 1, 1], [], []>} : vector<6x8xf32>, vector<8x128xf32>, vector<6x128xf32> -> vector<6x128xf32>
    %c0_76 = arith.constant 0 : index
    %c0_77 = arith.constant 0 : index
    %155 = vector.load %arg19[%c0_76, %c0_77] : memref<6x128xf32, #tpu.memory_space<vmem>>, vector<6x128xf32>
    tpu.vector_store %arg19[%c0_76, %c0_77], %154 {strides = array<i32>} : memref<6x128xf32, #tpu.memory_space<vmem>>, vector<6x128xf32>,
    return
  }
}

</mosaic_0001>

<bundles_post_ra>
// kernel: graph_node_classification_forward.1
= control target key start
LH: loop header
LB: loop body
LE: loop exit
PB: predicated region body
PF: predicated region fallthrough
CT: control target
= control target key end

     0   :  { %vm81_vm0 = vcmask 523264   ;;  %vm273_vm9 = vcmask 1041408   ;;  %vm260_vm10 = vcmask 31744   ;;  %vm362_vm11 = vcmask 1043456   ;;  %s2044_s2 = inlined_call_operand.vmem [shape: f32[64,64], index: 2, kind: input, shape index: {}]   ;;  %s2045_s1 = inlined_call_operand.vmem [shape: f32[64,4], index: 1, kind: input, shape index: {}]   ;;  %s2046_s5 = inlined_call_operand.vmem [shape: bf16[4,8], index: 5, kind: input, shape index: {}]   ;;  %s2047_s0 = inlined_call_operand.<no memory space> [shape: f32[1], index: 0, kind: input, shape index: {}]   ;;  %s2048_s7 = inlined_call_operand.vmem [shape: bf16[64,32], index: 7, kind: input, shape index: {}]   ;;  %s2049_s6 = inlined_call_operand.vmem [shape: f32[1,8], index: 6, kind: input, shape index: {}]   ;;  %s2050_s9 = inlined_call_operand.vmem [shape: bf16[32,16], index: 9, kind: input, shape index: {}]   ;;  %s2051_s8 = inlined_call_operand.vmem [shape: f32[1,32], index: 8, kind: input, shape index: {}]   ;;  %s2052_s11 = inlined_call_operand.vmem [shape: bf16[16,3], index: 11, kind: input, shape index: {}]   ;;  %s2053_s15 = inlined_call_operand.vmem [shape: bf16[16,16], index: 15, kind: input, shape index: {}]   ;;  %s2054_s3 = inlined_call_operand.vmem [shape: f32[8,8], index: 3, kind: input, shape index: {}]   ;;  %s2055_s10 = inlined_call_operand.vmem [shape: f32[1,16], index: 10, kind: input, shape index: {}]   ;;  %s2056_s13 = inlined_call_operand.vmem [shape: f32[1,16], index: 13, kind: input, shape index: {}]   ;;  %s2057_s14 = inlined_call_operand.vmem [shape: f32[1,16], index: 14, kind: input, shape index: {}]   ;;  %s2058_s17 = inlined_call_operand.vmem [shape: bf16[16,3], index: 17, kind: input, shape index: {}]   ;;  %s2059_s16 = inlined_call_operand.vmem [shape: f32[1,16], index: 16, kind: input, shape index: {}]   ;;  %s2060_s12 = inlined_call_operand.vmem [shape: f32[1,3], index: 12, kind: input, shape index: {}]   ;;  %s2061_s4 = inlined_call_operand.vmem [shape: s32[6,1], index: 4, kind: input, shape index: {}]   ;;  %s2062_s18 = inlined_call_operand.vmem [shape: f32[1,3], index: 18, kind: input, shape index: {}]   ;;  %s2063_s19 = inlined_call_operand.vmem [shape: f32[6,128], index: 19, kind: output, shape index: {}]  }
   0x1   :  { %2066 = sst [smem:[#allocation3_spill]] %s2044_s2  ;;  %vm1649_vm12 = vmmov 0   ;;  %vm358_vm13 = vcmask 64512   ;;  %vm779_vm14 = vcmask 261120   ;;  %vm840_vm15 = vcmask 130048  }
   0x2   :  { %2067 = sst [smem:[#allocation4_spill]] %s2045_s1 }
   0x3   :  { %2068 = sst [smem:[#allocation5_spill]] %s2046_s5 }
   0x4   :  { %2069 = sst [smem:[#allocation6_spill]] %s2047_s0 }
   0x5   :  { %s2070_s20 = sld [smem:[#allocation3_spill]] }
   0x6   :  { %s2071_s1 = sld [smem:[#allocation4_spill]] }
   0x7   :  { %s2072_s5 = sld [smem:[#allocation5_spill]] }
   0x8   :  { %s2073_s25 = sld [smem:[#allocation6_spill]] }
   0xb   :  { %v1754_v0 = vld [vmem:[%s2070_s20 + $0x30] sm:$0xff]  ;;  %v1759_v1 = vld [vmem:[%s2070_s20 + $0x20] sm:$0xff]  ;;  %v1764_v2 = vld [vmem:[%s2070_s20 + $0x38] sm:$0xff] }
   0xc   :  { %v100_v3 = vsel %vm81_vm0, %v1754_v0, 0.0  ;;  %v94_v4 = vsel %vm81_vm0, %v1759_v1, 0.0  ;;  %v133_v5 = vpack.c.bf16 %v1764_v2, %v1754_v0  ;;  %v1775_v6 = vld [vmem:[%s2070_s20 + $0x28] sm:$0xff]  ;;  %v1782_v8 = vld [vmem:[%s2070_s20 + $0x18] sm:$0xff]  ;;  %v1787_v9 = vld [vmem:[%s2070_s20 + $0x10] sm:$0xff]  ;;  %v103_v10 = vsel %vm81_vm0, %v1764_v2, 0.0 }
   0xd   :  { %101 = vadd.xlane.f32.xlu0 %v100_v3  ;;  %95 = vadd.xlane.f32.xlu1 %v94_v4  ;;  %v132_v7 = vpack.c.bf16 %v1775_v6, %v1759_v1  ;;  %v97_v11 = vsel %vm81_vm0, %v1775_v6, 0.0  ;;  %v131_v12 = vpack.c.bf16 %v1782_v8, %v1787_v9  ;;  %v91_v13 = vsel %vm81_vm0, %v1782_v8, 0.0  ;;  %v74_v15 = vld [vmem:[%s2070_s20 + $0x8] sm:$0xff]  ;;  %v73_v16 = vld [vmem:[%s2070_s20] sm:$0xff]  ;;  %v1815_v38 = vld [vmem:[%s2071_s1 + $0x30] sm:$0xff] }
   0xe   :  { %v88_v14 = vsel %vm81_vm0, %v1787_v9, 0.0  ;;  %v85_v17 = vsel %vm81_vm0, %v74_v15, 0.0  ;;  %v82_v18 = vsel %vm81_vm0, %v73_v16, 0.0  ;;  %v130_v19 = vpack.c.bf16 %v74_v15, %v73_v16  ;;  %v1820_v39 = vld [vmem:[%s2071_s1 + $0x38] sm:$0xff]  ;;  %v1825_v40 = vld [vmem:[%s2071_s1 + $0x20] sm:$0xff]  ;;  %v1830_v41 = vld [vmem:[%s2071_s1 + $0x28] sm:$0xff] }
   0xf   :  { %v68_v48 = vld [vmem:[%s2071_s1 + $0x18] sm:$0xff]  ;;  %v67_v50 = vld [vmem:[%s2071_s1 + $0x10] sm:$0xff]  ;;  %v66_v56 = vld [vmem:[%s2071_s1 + $0x8] sm:$0xff]  ;;  %v223_v1 = vstv %s2073_s25 }
  0x10   :  { %1496 = vmatprep.mubr.msk.bf16.mxu0 %vm81_vm0, %v130_v19  ;;  %v65_v57 = vld [vmem:[%s2071_s1] sm:$0xff] }
  0x11   :  { %104 = vadd.xlane.f32.xlu0 %v103_v10  ;;  %98 = vadd.xlane.f32.xlu1 %v97_v11  ;;  %v252_v3 = vld [vmem:[%s2072_s5] sm:$0x3]  ;;  %v224_v10 = vmul.f32 %v223_v1, %v65_v57  ;;  %v226_v11 = vmul.f32 %v223_v1, %v67_v50 }
  0x12   :  { %1615 = vmatprep.subr.msk.bf16.mxu1 %vm273_vm9, %v252_v3  ;;  %v275_v4 = vsel %vm273_vm9, %v252_v3, 0 }
  0x13   :  { %1505 = vmatpush3.bf16.msra.mxu1 %v275_v4 }
  0x15   :  { %92 = vadd.xlane.f32.xlu1 %v91_v13  ;;  %89 = vadd.xlane.f32.xlu0 %v88_v14 }
  0x19   :  { %86 = vadd.xlane.f32.xlu1 %v85_v17  ;;  %83 = vadd.xlane.f32.xlu0 %v82_v18 }
  0x96   :  { %v102_v20 = vpop.xlane.xlu0 %101  ;;  %v96_v21 = vpop.xlane.xlu1 %95 }
  0x97   :  { %vm112_vm1 = vcmp.eq.f32.partialorder %v102_v20, 0.0  ;;  %vm110_vm2 = vcmp.eq.f32.partialorder %v96_v21, 0.0 }
  0x98   :  { %v120_v22 = vsel %vm112_vm1, 1.0, %v102_v20  ;;  %v118_v23 = vsel %vm110_vm2, 1.0, %v96_v21  ;;  %vm1169_vm1 = vcmask 1042432   ;;  %vm1165_vm2 = vcmask 23552  }
  0x99   :  { %1626 = vrsqrt.f32 %v120_v22 }
  0x9a   :  { %v105_v24 = vpop.xlane.xlu0 %104  ;;  %v99_v25 = vpop.xlane.xlu1 %98  ;;  %1628 = vrsqrt.f32 %v118_v23 }
  0x9b   :  { %vm113_vm3 = vcmp.eq.f32.partialorder %v105_v24, 0.0  ;;  %vm111_vm4 = vcmp.eq.f32.partialorder %v99_v25, 0.0 }
  0x9c   :  { %v121_v26 = vsel %vm113_vm3, 1.0, %v105_v24  ;;  %v119_v27 = vsel %vm111_vm4, 1.0, %v99_v25  ;;  %v231_v24 = vmul.f32 %v223_v1, %v1820_v39  ;;  %v228_v25 = vmul.f32 %v223_v1, %v1825_v40 }
  0x9d   :  { %1630 = vrsqrt.f32 %v121_v26 }
  0x9e   :  { %1632 = vrsqrt.f32 %v119_v27  ;;  %v93_v28 = vpop.xlane.xlu1 %92  ;;  %v90_v29 = vpop.xlane.xlu0 %89 }
  0x9f   :  { %vm109_vm5 = vcmp.eq.f32.partialorder %v93_v28, 0.0  ;;  %vm108_vm6 = vcmp.eq.f32.partialorder %v90_v29, 0.0 }
  0xa0   :  { %v117_v30 = vsel %vm109_vm5, 1.0, %v93_v28  ;;  %v116_v31 = vsel %vm108_vm6, 1.0, %v90_v29  ;;  %v229_v28 = vmul.f32 %v223_v1, %v1830_v41  ;;  %v230_v29 = vmul.f32 %v223_v1, %v1815_v38 }
  0xa1   :  { %1634 = vrsqrt.f32 %v117_v30 }
  0xa2   :  { %1636 = vrsqrt.f32 %v116_v31  ;;  %v87_v32 = vpop.xlane.xlu1 %86  ;;  %v84_v33 = vpop.xlane.xlu0 %83 }
  0xa3   :  { %vm107_vm7 = vcmp.eq.f32.partialorder %v87_v32, 0.0  ;;  %vm106_vm8 = vcmp.eq.f32.partialorder %v84_v33, 0.0 }
  0xa4   :  { %v115_v34 = vsel %vm107_vm7, 1.0, %v87_v32  ;;  %v114_v35 = vsel %vm106_vm8, 1.0, %v84_v33 }
  0xa5   :  { %1638 = vrsqrt.f32 %v115_v34 }
  0xa6   :  { %1640 = vrsqrt.f32 %v114_v35  ;;  %v1808_v36 = vpop.eup %1626 }
  0xa7   :  { %v1810_v37 = vpop.eup %1628  ;;  %v140_v44 = vmul.f32 %v1808_v36, %v1815_v38  ;;  %v1648_v38 = vmov 0.0  }
  0xa8   :  { %v138_v46 = vmul.f32 %v1810_v37, %v1825_v40  ;;  %1514 = vmatprep.subr.bf16.mxu1 %v1648_v38 }
  0xaa   :  { %v1832_v42 = vpop.eup %1630 }
  0xab   :  { %v1834_v43 = vpop.eup %1632  ;;  %v141_v45 = vmul.f32 %v1832_v42, %v1820_v39 }
  0xac   :  { %v139_v47 = vmul.f32 %v1834_v43, %v1830_v41 }
  0xad   :  { %v145_v49 = vpack.c.bf16 %v141_v45, %v140_v44  ;;  %v1401_v45 = vld [vmem:[%s2049_s6] ss:$0 sm:$0xff] }
  0xae   :  { %v1635_v51 = vpop.eup %1634  ;;  %v144_v53 = vpack.c.bf16 %v139_v47, %v138_v46 }
  0xaf   :  { %v1637_v52 = vpop.eup %1636  ;;  %1488 = vmatprep.subr.bf16.mxu0 %v145_v49  ;;  %v137_v54 = vmul.f32 %v1635_v51, %v68_v48 }
  0xb0   :  { %1489 = vmatpush3.bf16.msra.mxu0 %v145_v49  ;;  %v136_v55 = vmul.f32 %v1637_v52, %v67_v50 }
  0xb1   :  { %1490 = vmatprep.subr.bf16.mxu0 %v144_v53 }
  0xb2   :  { %v1639_v58 = vpop.eup %1638  ;;  %v143_v59 = vpack.c.bf16 %v137_v54, %v136_v55 }
  0xb3   :  { %v1641_v60 = vpop.eup %1640  ;;  %v135_v61 = vmul.f32 %v1639_v58, %v66_v56 }
  0xb4   :  { %1491 = vmatpush3.bf16.msra.mxu0 %v144_v53  ;;  %v134_v62 = vmul.f32 %v1641_v60, %v65_v57 }
  0xb5   :  { %1492 = vmatprep.subr.bf16.mxu0 %v143_v59 }
  0xb6   :  { %v142_v63 = vpack.c.bf16 %v135_v61, %v134_v62  ;;  %v354_v62 = vld [vmem:[%s2048_s7] sm:$0xf] }
  0xb8   :  { %1493 = vmatpush3.bf16.msra.mxu0 %v143_v59 }
  0xb9   :  { %1494 = vmatprep.subr.bf16.mxu0 %v142_v63 }
  0xbc   :  { %1495 = vmatpush3.bf16.msra.mxu0 %v142_v63 }
  0xbd   :  { %1526 = vmatprep.subr.bf16.mxu0 %v1648_v38 }
  0xbf   :  { %1497 = vmatmul.mubr.msk.bf16.vlgmr.msra.gmra.mxu0 %vm81_vm0, %v131_v12 }
  0xc0   :  { %1500 = vmatprep.mubr.msk.bf16.mxu0 %vm81_vm0, %v132_v7  ;;  %v227_v7 = vmul.f32 %v223_v1, %v68_v48 }
  0xc7   :  { %1501 = vmatmul.mubr.msk.bf16.gmra.mxu0 %vm81_vm0, %v133_v5  ;;  %v225_v5 = vmul.f32 %v223_v1, %v66_v56 }
  0xc8   :  { %1528 = vmatprep.mubr.msk.bf16.mxu0 %vm1649_vm12, %v1648_v38 }
 0x17f   :  { %v1498_v8 = vpop.f32.mrf.mxu0 }
 0x180   :  { %v234_v12 = vmul.f32 %v1637_v52, %v1498_v8  ;;  %v550_v52 = vld [vmem:[%s2048_s7 + $0x10] sm:$0xf] }
 0x181   :  { %v192_v9 = vpop.f32.mrf.mxu0 }
 0x182   :  { %v232_v0 = vmul.f32 %v1641_v60, %v192_v9  ;;  %v242_v19 = vadd.f32 %v234_v12, %v226_v11  ;;  %v555_v60 = vsel %vm362_vm11, %v550_v52, 0  ;;  %v410_v9 = vsel %vm362_vm11, %v354_v62, 0 }
 0x183   :  { %v1499_v6 = vpop.f32.mrf.mxu0 }
 0x184   :  { %v235_v2 = vmul.f32 %v1635_v51, %v1499_v6  ;;  %v240_v17 = vadd.f32 %v232_v0, %v224_v10 }
 0x185   :  { %v195_v13 = vpop.f32.mrf.mxu0 }
 0x186   :  { %v233_v14 = vmul.f32 %v1639_v58, %v195_v13  ;;  %v243_v15 = vadd.f32 %v235_v2, %v227_v7  ;;  %v648_v7 = vld [vmem:[%s2048_s7 + $0x18] sm:$0xf]  ;;  %v500_v2 = vld [vmem:[%s2048_s7 + $0xc] sm:$0xf] }
 0x187   :  { %v1502_v16 = vpop.f32.mrf.mxu0  ;;  %v653_v12 = vsel %vm362_vm11, %v648_v7, 0 }
 0x188   :  { %v241_v18 = vadd.f32 %v233_v14, %v225_v5  ;;  %v249_v22 = vpack.c.bf16 %v243_v15, %v242_v19  ;;  %v238_v30 = vmul.f32 %v1808_v36, %v1502_v16  ;;  %v452_v36 = vld [vmem:[%s2048_s7 + $0x8] sm:$0xf]  ;;  %v507_v14 = vsel %vm362_vm11, %v500_v2, 0  ;;  %v922_v2 = vld [vmem:[%s2054_s3] sm:$0xff] }
 0x189   :  { %v208_v20 = vpop.f32.mrf.mxu0  ;;  %v457_v41 = vsel %vm362_vm11, %v452_v36, 0 }
 0x18a   :  { %v248_v21 = vpack.c.bf16 %v241_v18, %v240_v17  ;;  %v236_v26 = vmul.f32 %v1810_v37, %v208_v20  ;;  %v246_v39 = vadd.f32 %v238_v30, %v230_v29  ;;  %1527 = vmatpush3.bf16.msra.mxu0 %v457_v41  ;;  %v598_v17 = vld [vmem:[%s2048_s7 + $0x14] sm:$0xf] }
 0x18b   :  { %v1503_v23 = vpop.f32.mrf.mxu0  ;;  %1538 = vmatprep.subr.bf16.mxu0 %v1648_v38  ;;  %v605_v20 = vsel %vm362_vm11, %v598_v17, 0 }
 0x18c   :  { %v239_v27 = vmul.f32 %v1832_v42, %v1503_v23  ;;  %1506 = vmatprep.mubr.msk.bf16.mxu1 %vm260_vm10, %v248_v21  ;;  %v244_v34 = vadd.f32 %v236_v26, %v228_v25  ;;  %v355_v42 = vld [vmem:[%s2048_s7 + $0x4] sm:$0xf]  ;;  %v696_v21 = vld [vmem:[%s2048_s7 + $0x1c] sm:$0xf]  ;;  %v1621_v25 = vld [vmem:[%s2050_s9 + $0x8] sm:$0xff]  }
 0x18d   :  { %v211_v31 = vpop.f32.mrf.mxu0  ;;  %1507 = vmatmul.mubr.msk.bf16.vlgmr.msra.gmra.mxu1 %vm260_vm10, %v249_v22  ;;  %v703_v23 = vsel %vm362_vm11, %v696_v21, 0  ;;  %v1622_v26 = vld [vmem:[%s2050_s9] sm:$0xff]  }
 0x18e   :  { %v237_v32 = vmul.f32 %v1834_v43, %v211_v31  ;;  %v247_v33 = vadd.f32 %v239_v27, %v231_v24  ;;  %v364_v43 = vsel %vm362_vm11, %v355_v42, 0 }
 0x18f   :  { %1515 = vmatpush3.bf16.msra.mxu1 %v364_v43 }
 0x190   :  { %v245_v35 = vadd.f32 %v237_v32, %v229_v28  ;;  %v251_v40 = vpack.c.bf16 %v247_v33, %v246_v39  ;;  %1520 = vmatprep.subr.bf16.mxu1 %v1648_v38 }
 0x192   :  { %v250_v37 = vpack.c.bf16 %v245_v35, %v244_v34 }
 0x194   :  { %1510 = vmatprep.mubr.msk.bf16.mxu1 %vm260_vm10, %v250_v37 }
 0x195   :  { %1511 = vmatmul.mubr.msk.bf16.gmra.mxu1 %vm260_vm10, %v251_v40 }
 0x196   :  { %1516 = vmatprep.mubr.msk.bf16.mxu1 %vm1649_vm12, %v1648_v38 }
 0x24d   :  { %v1508_v44 = vpop.f32.mrf.mxu1 }
 0x24e   :  { %v320_v47 = vadd.f32 %v1508_v44, %v1401_v45 }
 0x24f   :  { %v311_v46 = vpop.f32.mrf.mxu1 }
 0x250   :  { %v312_v49 = vadd.f32 %v1401_v45, %v311_v46  ;;  %v344_v53 = vmax.f32 %v320_v47, 0.0 }
 0x251   :  { %v1509_v48 = vpop.f32.mrf.mxu1 }
 0x252   :  { %v323_v50 = vadd.f32 %v1509_v48, %v1401_v45  ;;  %v342_v57 = vmax.f32 %v312_v49, 0.0 }
 0x253   :  { %v314_v51 = vpop.f32.mrf.mxu1 }
 0x254   :  { %v345_v54 = vmax.f32 %v323_v50, 0.0  ;;  %v315_v55 = vadd.f32 %v1401_v45, %v314_v51 }
 0x255   :  { %v1512_v56 = vpop.f32.mrf.mxu1 }
 0x256   :  { %v351_v58 = vpack.c.bf16 %v345_v54, %v344_v53  ;;  %v343_v59 = vmax.f32 %v315_v55, 0.0  ;;  %v336_v13 = vadd.f32 %v1512_v56, %v1401_v45 }
 0x257   :  { %v327_v61 = vpop.f32.mrf.mxu1 }
 0x258   :  { %v350_v63 = vpack.c.bf16 %v343_v59, %v342_v57  ;;  %1529 = vmatmul.mubr.msk.bf16.vlgmr.msra.gmra.mxu0 %vm358_vm13, %v351_v58  ;;  %v328_v8 = vadd.f32 %v1401_v45, %v327_v61  ;;  %v348_v16 = vmax.f32 %v336_v13, 0.0  ;;  %v502_v19 = vrot.slane %v351_v58, 4 }
 0x259   :  { %v1513_v3 = vpop.f32.mrf.mxu1  ;;  %1539 = vmatpush3.bf16.msra.mxu0 %v555_v60  ;;  %1540 = vmatprep.mubr.msk.bf16.mxu0 %vm1649_vm12, %v1648_v38 }
 0x25a   :  { %v357_v4 = vrot.slane %v350_v63, 4  ;;  %1550 = vmatprep.subr.bf16.mxu0 %v1648_v38  ;;  %v346_v10 = vmax.f32 %v328_v8, 0.0  ;;  %v339_v5 = vadd.f32 %v1513_v3, %v1401_v45 }
 0x25b   :  { %v330_v1 = vpop.f32.mrf.mxu1 }
 0x25c   :  { %v331_v6 = vadd.f32 %v1401_v45, %v330_v1  ;;  %1517 = vmatmul.mubr.msk.bf16.vlgmr.msra.gmra.mxu1 %vm358_vm13, %v357_v4  ;;  %v349_v15 = vmax.f32 %v339_v5, 0.0  ;;  %v923_v5 = vsel %vm358_vm13, %v922_v2, 0.0 }
 0x25d   :  { %1521 = vmatpush3.bf16.msra.mxu1 %v410_v9  ;;  %1522 = vmatprep.mubr.msk.bf16.mxu1 %vm1649_vm12, %v1648_v38 }
 0x25e   :  { %v347_v0 = vmax.f32 %v331_v6, 0.0  ;;  %1532 = vmatprep.subr.bf16.mxu1 %v1648_v38  ;;  %v353_v18 = vpack.c.bf16 %v349_v15, %v348_v16  ;;  %924 = vadd.xlane.f32.xlu0 %v923_v5 }
 0x260   :  { %v352_v11 = vpack.c.bf16 %v347_v0, %v346_v10  ;;  %v698_v24 = vrot.slane %v353_v18, 4  ;;  %v1623_v10 = vld [vmem:[%s2052_s11] sm:$0xff]  }
 0x261   :  { %v1624_v0 = vld [vmem:[%s2053_s15] sm:$0xff]  }
 0x262   :  { %1541 = vmatmul.mubr.msk.bf16.vlgmr.msra.gmra.mxu0 %vm358_vm13, %v352_v11  ;;  %v600_v22 = vrot.slane %v352_v11, 4  ;;  %v1415_v11 = vld [vmem:[%s2055_s10] ss:$0 sm:$0xff] }
 0x263   :  { %1551 = vmatpush3.bf16.msra.mxu0 %v653_v12  ;;  %1552 = vmatprep.mubr.msk.bf16.mxu0 %vm1649_vm12, %v1648_v38 }
 0x264   :  { %1523 = vmatmul.mubr.msk.bf16.vlgmr.msra.gmra.mxu1 %vm358_vm13, %v350_v63  ;;  %1562 = vmatprep.subr.bf16.mxu0 %v1648_v38  ;;  %v1414_v63 = vld [vmem:[%s2051_s8] ss:$0 sm:$0xff] }
 0x265   :  { %1533 = vmatpush3.bf16.msra.mxu1 %v507_v14  ;;  %1534 = vmatprep.mubr.msk.bf16.mxu1 %vm1649_vm12, %v1648_v38 }
 0x266   :  { %1544 = vmatprep.subr.bf16.mxu1 %v1648_v38 }
 0x26a   :  { %1553 = vmatmul.mubr.msk.bf16.vlgmr.msra.gmra.mxu0 %vm358_vm13, %v353_v18 }
 0x26b   :  { %1566 = vmatprep.mubr.msk.bf16.mxu0 %vm1649_vm12, %v1648_v38  ;;  %1563 = vmatpush3.bf16.msra.mxu0 %v1621_v25 }
 0x26c   :  { %1535 = vmatmul.mubr.msk.bf16.vlgmr.msra.gmra.mxu1 %vm358_vm13, %v502_v19  ;;  %1564 = vmatprep.subr.bf16.mxu0 %v1648_v38 }
 0x26d   :  { %1545 = vmatpush3.bf16.msra.mxu1 %v605_v20  ;;  %1546 = vmatprep.mubr.msk.bf16.mxu1 %vm1649_vm12, %v1648_v38 }
 0x26e   :  { %1556 = vmatprep.subr.bf16.mxu1 %v1648_v38 }
 0x26f   :  { %1565 = vmatpush3.bf16.msra.mxu0 %v1622_v26 }
 0x270   :  { %1576 = vmatprep.subr.bf16.mxu0 %v1648_v38 }
 0x274   :  { %1547 = vmatmul.mubr.msk.bf16.vlgmr.msra.gmra.mxu1 %vm358_vm13, %v600_v22 }
 0x275   :  { %1557 = vmatpush3.bf16.msra.mxu1 %v703_v23  ;;  %1558 = vmatprep.mubr.msk.bf16.mxu1 %vm1649_vm12, %v1648_v38 }
 0x276   :  { %1570 = vmatprep.subr.bf16.mxu1 %v1648_v38 }
 0x27c   :  { %1559 = vmatmul.mubr.msk.bf16.vlgmr.msra.gmra.mxu1 %vm358_vm13, %v698_v24 }
 0x27d   :  { %1572 = vmatprep.mubr.msk.bf16.mxu1 %vm1649_vm12, %v1648_v38  ;;  %1571 = vmatpush3.bf16.msra.mxu1 %v1623_v10  ;;  %v1426_v10 = vld [vmem:[%s2059_s16] ss:$0 sm:$0xff] }
 0x27e   :  { %1582 = vmatprep.subr.bf16.mxu1 %v1648_v38 }
 0x318   :  { %v493_v27 = vpop.f32.mrf.mxu0 }
 0x31a   :  { %v1530_v28 = vpop.f32.mrf.mxu0 }
 0x31c   :  { %v400_v29 = vpop.f32.mrf.mxu1  ;;  %v496_v30 = vpop.f32.mrf.mxu0 }
 0x31e   :  { %v1518_v31 = vpop.f32.mrf.mxu1  ;;  %v1531_v32 = vpop.f32.mrf.mxu0 }
 0x320   :  { %v403_v33 = vpop.f32.mrf.mxu1 }
 0x322   :  { %v1519_v34 = vpop.f32.mrf.mxu1  ;;  %v591_v35 = vpop.f32.mrf.mxu0 }
 0x324   :  { %v446_v39 = vpop.f32.mrf.mxu1  ;;  %v1542_v37 = vpop.f32.mrf.mxu0 }
 0x325   :  { %v447_v45 = vadd.f32 %v446_v39, %v400_v29 }
 0x326   :  { %v1524_v40 = vpop.f32.mrf.mxu1  ;;  %v594_v36 = vpop.f32.mrf.mxu0 }
 0x327   :  { %v499_v50 = vadd.f32 %v493_v27, %v447_v45  ;;  %v1422_v36 = vld [vmem:[%s2056_s13] ss:$0 sm:$0xff] }
 0x328   :  { %v449_v41 = vpop.f32.mrf.mxu1  ;;  %v1543_v42 = vpop.f32.mrf.mxu0 }
 0x329   :  { %v1423_v42 = vld [vmem:[%s2057_s14] ss:$0 sm:$0xff] }
 0x32a   :  { %v1525_v43 = vpop.f32.mrf.mxu1  ;;  %v689_v44 = vpop.f32.mrf.mxu0 }
 0x32c   :  { %v543_v46 = vpop.f32.mrf.mxu1  ;;  %v1554_v47 = vpop.f32.mrf.mxu0 }
 0x32d   :  { %v549_v53 = vadd.f32 %v543_v46, %v499_v50  ;;  %v927_v50 = vrot.slane %v923_v5, 4 }
 0x32e   :  { %v1536_v48 = vpop.f32.mrf.mxu1  ;;  %v692_v49 = vpop.f32.mrf.mxu0 }
 0x32f   :  { %v597_v56 = vadd.f32 %v591_v35, %v549_v53 }
 0x330   :  { %v546_v51 = vpop.f32.mrf.mxu1  ;;  %v1555_v52 = vpop.f32.mrf.mxu0 }
 0x331   :  { %v928_v51 = vadd.f32 %v927_v50, %v923_v5 }
 0x332   :  { %v1537_v54 = vpop.f32.mrf.mxu1 }
 0x333   :  { %v929_v52 = vrot.slane %v928_v51, 2 }
 0x334   :  { %v641_v55 = vpop.f32.mrf.mxu1 }
 0x335   :  { %v647_v58 = vadd.f32 %v641_v55, %v597_v56  ;;  %v930_v53 = vadd.f32 %v929_v52, %v928_v51  ;;  %v925_v55 = vpop.xlane.xlu0 %924 }
 0x336   :  { %v1548_v57 = vpop.f32.mrf.mxu1 }
 0x337   :  { %v695_v61 = vadd.f32 %v689_v44, %v647_v58  ;;  %v931_v54 = vrot.slane %v930_v53, 1 }
 0x338   :  { %v644_v59 = vpop.f32.mrf.mxu1 }
 0x339   :  { %v932_v56 = vadd.f32 %v931_v54, %v930_v53 }
 0x33a   :  { %v1549_v60 = vpop.f32.mrf.mxu1 }
 0x33c   :  { %v739_v62 = vpop.f32.mrf.mxu1 }
 0x33d   :  { %v745_v3 = vadd.f32 %v739_v62, %v695_v61 }
 0x33e   :  { %v1560_v4 = vpop.f32.mrf.mxu1 }
 0x33f   :  { %v753_v8 = vadd.f32 %v1414_v63, %v745_v3 }
 0x340   :  { %v742_v9 = vpop.f32.mrf.mxu1 }
 0x341   :  { %v754_v1 = vmax.f32 %v753_v8, 0.0 }
 0x342   :  { %v1561_v6 = vpop.f32.mrf.mxu1 }
 0x343   :  { %v755_v7 = vpack.c.bf16 %v754_v1, %v754_v1  ;;  %v1625_v1 = vld [vmem:[%s2058_s17] sm:$0xff]   ;;  %v1147_v6 = vlaneseq }
 0x345   :  { %1567 = vmatmul.mubr.msk.bf16.vlgmr.msra.gmra.mxu0 %vm779_vm14, %v755_v7  ;;  %v1157_v7 = vshrl.u32 %v1147_v6, 7 }
 0x346   :  { %1578 = vmatprep.mubr.msk.bf16.mxu0 %vm1649_vm12, %v1648_v38  ;;  %1577 = vmatpush3.bf16.msra.mxu0 %v1624_v0  ;;  %v1148_v0 = vand.u32 127, %v1147_v6 }
 0x347   :  { %1588 = vmatprep.subr.bf16.mxu0 %v1648_v38 }
 0x348   :  { %vm1158_vm3 = vcmp.eq.s32.totalorder %v1148_v0, %v1157_v7 }
 0x405   :  { %v817_v12 = vpop.f32.mrf.mxu0 }
 0x406   :  { %v818_v13 = vadd.f32 %v1415_v11, %v817_v12 }
 0x407   :  { %v1568_v14 = vpop.f32.mrf.mxu0 }
 0x408   :  { %v823_v15 = vmax.f32 %v818_v13, 0.0  ;;  %v884_v16 = vsel %vm840_vm15, %v818_v13, 0.0 }
 0x409   :  { %v885_v17 = vrot.slane %v884_v16, 4  ;;  %v820_v18 = vpop.f32.mrf.mxu0 }
 0x40a   :  { %v824_v19 = vpack.c.bf16 %v823_v15, %v823_v15  ;;  %v1419_v18 = vld [vmem:[%s2060_s12] ss:$0 sm:$0xff] }
 0x40b   :  { %v886_v20 = vadd.f32 %v885_v17, %v884_v16  ;;  %v1569_v21 = vpop.f32.mrf.mxu0 }
 0x40c   :  { %1573 = vmatmul.mubr.msk.bf16.vlgmr.msra.gmra.mxu1 %vm840_vm15, %v824_v19 }
 0x40d   :  { %v887_v22 = vrot.slane %v886_v20, 2  ;;  %1584 = vmatprep.mubr.msk.bf16.mxu1 %vm1649_vm12, %v1648_v38 }
 0x40f   :  { %v888_v23 = vadd.f32 %v887_v22, %v886_v20 }
 0x411   :  { %v889_v24 = vrot.slane %v888_v23, 1 }
 0x413   :  { %v890_v25 = vadd.f32 %v889_v24, %v888_v23 }
 0x415   :  { %v892_v26 = vmul.f32 0.125, %v890_v25 }
 0x417   :  { %v893_v27 = vsub.f32 %v818_v13, %v892_v26 }
 0x419   :  { %v894_v28 = vmul.f32 %v893_v27, %v893_v27 }
 0x41b   :  { %v895_v29 = vsel %vm840_vm15, %v894_v28, 0.0  ;;  %v1433_v28 = vsel %vm1158_vm3, 1.0, %v1648_v38 }
 0x41c   :  { %v896_v30 = vrot.slane %v895_v29, 4 }
 0x41e   :  { %v897_v31 = vadd.f32 %v896_v30, %v895_v29  ;;  %v1650_v29 = vmov 0   ;;  %v1149_v30 = vld [vmem:[%s2061_s4] sm:$0x3f] }
 0x41f   :  { %1619 = vset.pattern.permute.xlu1 %v1650_v29  ;;  %1620 = vset.pattern.permute.xlu0 %v1650_v29 }
 0x420   :  { %v898_v32 = vrot.slane %v897_v31, 2  ;;  %1151 = vperm.xlu1 %1619, %v1149_v30  }
 0x422   :  { %v899_v33 = vadd.f32 %v898_v32, %v897_v31  ;;  %v1430_v31 = vld [vmem:[%s2062_s18] ss:$0 sm:$0xff] }
 0x424   :  { %v900_v34 = vrot.slane %v899_v33, 1 }
 0x426   :  { %v901_v35 = vadd.f32 %v900_v34, %v899_v33 }
 0x428   :  { %v902_v39 = vmul.f32 0.125, %v901_v35 }
 0x42a   :  { %v903_v37 = vadd.f32 1e-05, %v902_v39 }
 0x42c   :  { %1642 = vrsqrt.f32 %v903_v37 }
 0x42d   :  { %1644 = vrsqrt.f32 %v925_v55 }
 0x42e   :  { %1646 = vrsqrt.f32 %v932_v56 }
 0x439   :  { %v1643_v40 = vpop.eup %1642 }
 0x43a   :  { %v905_v41 = vmul.f32 %v1643_v40, %v893_v27  ;;  %v1645_v57 = vpop.eup %1644 }
 0x43b   :  { %v934_v58 = vmul.f32 %v1645_v57, %v922_v2  ;;  %v1647_v59 = vpop.eup %1646  ;;  %v1161_v2 = vadd.s32 3, %v1157_v7 }
 0x43c   :  { %v913_v43 = vmul.f32 %v1422_v36, %v905_v41 }
 0x43d   :  { %v935_v60 = vmul.f32 %v1647_v59, %v934_v58  ;;  %vm1162_vm0 = vcmp.eq.s32.totalorder %v1148_v0, %v1161_v2 }
 0x43e   :  { %v921_v44 = vadd.f32 %v1423_v42, %v913_v43  ;;  %v1434_v16 = vsel %vm1162_vm0, 1.0, %v1648_v38 }
 0x43f   :  { %v936_v4 = vpack.c.bf16 %v935_v60, %v935_v60 }
 0x440   :  { %v937_v45 = vpack.c.bf16 %v921_v44, %v921_v44 }
 0x442   :  { %1579 = vmatmul.mubr.msk.bf16.vlgmr.msra.gmra.mxu0 %vm840_vm15, %v937_v45 }
 0x443   :  { %1590 = vmatprep.mubr.msk.bf16.mxu0 %vm1649_vm12, %v1648_v38  ;;  %1589 = vmatpush3.bf16.msra.mxu0 %v1625_v1 }
 0x444   :  { %1600 = vmatprep.subr.mxu0 %v1648_v38 }
 0x49b   :  { %v1152_v37 = vpop.permute.xlu1 %1151 }
 0x49c   :  { %vm1153_vm4 = vcmp.eq.s32.totalorder %v1148_v0, %v1152_v37 }
 0x49d   :  { %v1432_v41 = vsel %vm1153_vm4, 1.0, %v1648_v38 }
 0x4cc   :  { %v878_v46 = vpop.f32.mrf.mxu1 }
 0x4cd   :  { %v879_v19 = vadd.f32 %v1419_v18, %v878_v46 }
 0x4ce   :  { %v1574_v47 = vpop.f32.mrf.mxu1 }
 0x4d0   :  { %v881_v48 = vpop.f32.mrf.mxu1 }
 0x4d2   :  { %v1575_v49 = vpop.f32.mrf.mxu1 }
 0x502   :  { %v983_v61 = vpop.f32.mrf.mxu0 }
 0x503   :  { %v989_v62 = vpack.c.bf16 %v983_v61, %v983_v61 }
 0x504   :  { %v1580_v63 = vpop.f32.mrf.mxu0 }
 0x505   :  { %v1001_v3 = vsel %vm362_vm11, %v989_v62, 0 }
 0x506   :  { %v986_v8 = vpop.f32.mrf.mxu0  ;;  %1583 = vmatpush3.bf16.msra.mxu1 %v1001_v3 }
 0x507   :  { %1594 = vmatprep.subr.bf16.mxu1 %v1648_v38 }
 0x508   :  { %v1581_v9 = vpop.f32.mrf.mxu0 }
 0x509   :  { %1585 = vmatmul.mubr.msk.bf16.vlgmr.msra.gmra.mxu1 %vm358_vm13, %v936_v4 }
 0x50a   :  { %1596 = vmatprep.mubr.msk.bf16.mxu1 %vm1649_vm12, %v1648_v38 }
 0x5c9   :  { %v1037_v5 = vpop.f32.mrf.mxu1 }
 0x5ca   :  { %v1038_v11 = vadd.f32 %v1426_v10, %v1037_v5 }
 0x5cb   :  { %v1586_v12 = vpop.f32.mrf.mxu1 }
 0x5cc   :  { %v1043_v13 = vmax.f32 %v1038_v11, 0.0 }
 0x5cd   :  { %v1040_v14 = vpop.f32.mrf.mxu1 }
 0x5ce   :  { %v1044_v15 = vpack.c.bf16 %v1043_v13, %v1043_v13 }
 0x5cf   :  { %v1587_v17 = vpop.f32.mrf.mxu1 }
 0x5d0   :  { %1591 = vmatmul.mubr.msk.bf16.vlgmr.msra.gmra.mxu0 %vm840_vm15, %v1044_v15 }
 0x5d1   :  { %1601 = vmatpush3.msk.msra.mxu0 %vm1169_vm1, %v1434_v16  ;;  %1602 = vmatprep.mubr.msk.f32.mxu0 %vm1649_vm12, %v1648_v38 }
 0x5d2   :  { %1605 = vmatprep.subr.mxu0 %v1648_v38 }
 0x5d8   :  { %1603 = vmatmul.mubr.msk.f32.vlgmr.msra.gmra.mxu0 %vm1165_vm2, %v879_v19 }
 0x5d9   :  { %1607 = vmatprep.mubr.msk.f32.mxu0 %vm1649_vm12, %v1648_v38  ;;  %1606 = vmatpush3.msk.msra.mxu0 %vm1169_vm1, %v1433_v28 }
 0x690   :  { %v1090_v20 = vpop.f32.mrf.mxu0 }
 0x691   :  { %v1096_v21 = vpack.c.bf16 %v1090_v20, %v1090_v20 }
 0x692   :  { %v1592_v22 = vpop.f32.mrf.mxu0 }
 0x693   :  { %v1105_v23 = vsel %vm362_vm11, %v1096_v21, 0 }
 0x694   :  { %v1093_v24 = vpop.f32.mrf.mxu0  ;;  %1595 = vmatpush3.bf16.msra.mxu1 %v1105_v23 }
 0x695   :  { %1610 = vmatprep.subr.mxu1 %v1648_v38 }
 0x696   :  { %v1593_v25 = vpop.f32.mrf.mxu0 }
 0x697   :  { %1597 = vmatmul.mubr.msk.bf16.vlgmr.msra.gmra.mxu1 %vm358_vm13, %v936_v4 }
 0x698   :  { %v1239_v26 = vpop.f32.mrf.mxu0  ;;  %1612 = vmatprep.mubr.msk.f32.mxu1 %vm1649_vm12, %v1648_v38 }
 0x69a   :  { %v1604_v27 = vpop.f32.mrf.mxu0 }
 0x757   :  { %v1141_v32 = vpop.f32.mrf.mxu1 }
 0x758   :  { %v1142_v33 = vadd.f32 %v1430_v31, %v1141_v32 }
 0x759   :  { %v1598_v34 = vpop.f32.mrf.mxu1 }
 0x75a   :  { %1608 = vmatmul.mubr.msk.f32.vlgmr.msra.gmra.mxu0 %vm1165_vm2, %v1142_v33 }
 0x75b   :  { %v1144_v35 = vpop.f32.mrf.mxu1 }
 0x75d   :  { %v1599_v39 = vpop.f32.mrf.mxu1 }
 0x81a   :  { %v1315_v40 = vpop.f32.mrf.mxu0 }
 0x81b   :  { %v1316_v36 = vadd.f32 %v1315_v40, %v1239_v26 }
 0x81c   :  { %v1609_v42 = vpop.f32.mrf.mxu0 }
 0x81d   :  { %1611 = vmatpush3.msra.mxu1 %v1316_v36 }
 0x81e   :  { %1613 = vmatmul.mubr.msk.f32.vlgmr.msra.gmra.mxu1 %vm358_vm13, %v1432_v41 }
 0x8de   :  { %v1388_v43 = vpop.f32.mrf.mxu1 }
 0x8df   :  { %1392 = vst [vmem:[%s2063_s19] sm:$0x3f] %v1388_v43 }
 0x8e0   :  { %v1614_v44 = vpop.f32.mrf.mxu1 }

</bundles_post_ra>
